<compile_context>
chip_gen: v6e
topology: v6e:2x2x1
jax: 0.10.0
libtpu: 0.0.40
codegen_flags: <defaults>
</compile_context>

<pallas_src>
import math

import jax
import jax.numpy as jnp
from jax.experimental import pallas as pl
from jax.experimental.pallas import tpu as pltpu

_HIGHEST = jax.lax.Precision.HIGHEST
_TARGET_COLS = 32 * 1024   # ~1 MiB f32 per (8, TN) slab: amortizes ~0.35 us/step overhead


def _wl_kernel_bias(mt_ref, b_ref, xt_ref, ot_ref):
    # mt_ref: (CP, CP) blkdiag(M^T,...)   b_ref: (CP, TN) packed bias (resident)
    # xt_ref: (CP, TN) packed feature-major x block   ot_ref: (CP, TN) output block
    yt = jnp.dot(mt_ref[...], xt_ref[...],
                 preferred_element_type=jnp.float32, precision=_HIGHEST)
    ot_ref[...] = jnp.maximum(yt + b_ref[...], 0.0).astype(ot_ref.dtype)


def _wl_kernel_nobias(mt_ref, xt_ref, ot_ref):
    yt = jnp.dot(mt_ref[...], xt_ref[...],
                 preferred_element_type=jnp.float32, precision=_HIGHEST)
    ot_ref[...] = jnp.maximum(yt, 0.0).astype(ot_ref.dtype)


def weight_layer_forward(x, corr_adj, w, bias=None):
    """relu(x @ corr_adj @ w [+ bias]).
    x: (B, window_size, n_features); corr_adj, w: (n_features, n_features);
    bias: (window_size, n_features) or None.  Matches WeightLayer.forward."""
    B, T, C = x.shape
    N = B * T
    dtype = x.dtype

    # ---- fold parameters in the wrapper (tiny (C,C) math, plain XLA) ----
    m = jnp.matmul(corr_adj.astype(jnp.float32), w.astype(jnp.float32),
                   precision=_HIGHEST)                   # M = corr_adj @ w
    mt = m.T                                             # y^T = M^T @ x^T

    # ---- sublane packing: P samples per column so CP = P*C fills the 8 f32 sublanes
    P = 8 // C if (C < 8 and 8 % C == 0) else 1
    CP = P * C
    mt_bd = jnp.zeros((CP, CP), jnp.float32)
    for p in range(P):
        mt_bd = mt_bd.at[p * C:(p + 1) * C, p * C:(p + 1) * C].set(mt)

    # ---- lane tiling: TN columns per grid step (lane-dense + bias-periodic) ----
    rep = T // math.gcd(T, P)                            # bias period in packed columns
    step = (128 * rep) // math.gcd(128, rep)             # lcm(128, rep)
    ncols = -(-N // P)                                   # packed columns needed
    tn = step * max(1, -(-min(ncols, _TARGET_COLS) // step))
    ncols_pad = -(-ncols // tn) * tn
    n_pad = ncols_pad * P
    grid = (ncols_pad // tn,)

    # ---- feature-major, sublane-packed activation slab (layout plumbing) ----
    x_flat = x.reshape(N, C)
    if n_pad != N:
        x_flat = jnp.pad(x_flat, ((0, n_pad - N), (0, 0)))
    xt = x_flat.reshape(ncols_pad, CP).T                 # (CP, ncols_pad)

    cparams = pltpu.CompilerParams(dimension_semantics=("parallel",))
    m_spec = pl.BlockSpec((CP, CP), lambda i: (0, 0))    # resident across the grid
    x_spec = pl.BlockSpec((CP, tn), lambda i: (0, i))
    o_spec = pl.BlockSpec((CP, tn), lambda i: (0, i))

    if bias is not None:
        # One block-wide packed bias; constant index_map -> DMA'd once, stays resident.
        reps = (tn * P) // T                             # exact by construction of tn
        b_block = jnp.tile(bias.astype(jnp.float32), (reps, 1)).reshape(tn, CP).T
        out_t = pl.pallas_call(
            _wl_kernel_bias,
            out_shape=jax.ShapeDtypeStruct((CP, ncols_pad), dtype),
            grid=grid,
            in_specs=[m_spec, pl.BlockSpec((CP, tn), lambda i: (0, 0)), x_spec],
            out_specs=o_spec,
            compiler_params=cparams,
        )(mt_bd, b_block, xt)
    else:
        out_t = pl.pallas_call(
            _wl_kernel_nobias,
            out_shape=jax.ShapeDtypeStruct((CP, ncols_pad), dtype),
            grid=grid,
            in_specs=[m_spec, x_spec],
            out_specs=o_spec,
            compiler_params=cparams,
        )(mt_bd, xt)

    # ---- unpack back to (B, T, C) ----
    return out_t.T.reshape(n_pad, C)[:N].reshape(B, T, C)


def _reference(x, corr_adj, w, bias=None):
    # Same op order as the PyTorch module.
    y = jnp.matmul(jnp.matmul(x, corr_adj, precision=_HIGHEST), w, precision=_HIGHEST)
    if bias is not None:
        y = y + bias[None, :, :]
    return jnp.maximum(y, 0.0)


if __name__ == "__main__":
    # Small shapes consistent with the module: batch=2, window_size=16, n_features=4.
    B, T, C = 2, 16, 4
    key = jax.random.PRNGKey(0)
    kx, ka, kw, kb = jax.random.split(key, 4)

    x = jax.random.normal(kx, (B, T, C), dtype=jnp.float32)
    corr_adj = jax.random.uniform(ka, (C, C), dtype=jnp.float32)   # synthetic corr-adjacency
    w = jax.random.normal(kw, (C, C), dtype=jnp.float32) * 0.5     # xavier-ish scale
    bias = jax.random.normal(kb, (T, C), dtype=jnp.float32) * 0.1  # nonzero bias

    # use_bias=True path
    out = jax.block_until_ready(weight_layer_forward(x, corr_adj, w, bias))
    ref = _reference(x, corr_adj, w, bias)
    assert out.shape == (B, T, C)
    err = float(jnp.max(jnp.abs(out - ref)))
    assert jnp.allclose(out, ref, atol=1e-3, rtol=1e-3), err

    # use_bias=False path (separate kernel variant; no zero-bias slab streamed)
    out_nb = jax.block_until_ready(weight_layer_forward(x, corr_adj, w, None))
    ref_nb = _reference(x, corr_adj, w, None)
    err_nb = float(jnp.max(jnp.abs(out_nb - ref_nb)))
    assert jnp.allclose(out_nb, ref_nb, atol=1e-3, rtol=1e-3), err_nb

    print("KERNEL_OK")
</pallas_src>

<mosaic_0001>
module attributes {stable_mosaic.version = 11 : i64} {
  func.func @_wl_kernel_bias(%arg0: i32, %arg1: memref<8x8xf32, #tpu.memory_space<vmem>>, %arg2: memref<8x128xf32, #tpu.memory_space<vmem>>, %arg3: memref<8x128xf32, #tpu.memory_space<vmem>>, %arg4: memref<8x128xf32, #tpu.memory_space<vmem>>) attributes {dimension_semantics = [#tpu.dimension_semantics<parallel>], iteration_bounds = array<i64: 1>, scalar_prefetch = 0 : i64, scratch_operands = 0 : i64, tpu.core_type = #tpu.core_type<tc>, window_params = [{pipeline_mode = #tpu.pipeline_mode<synchronous>, transform_indices = @transform_0, window_bounds = array<i64: 8, 8>}, {pipeline_mode = #tpu.pipeline_mode<synchronous>, transform_indices = @transform_1, window_bounds = array<i64: 8, 128>}, {transform_indices = @transform_2, window_bounds = array<i64: 8, 128>}, {transform_indices = @transform_3, window_bounds = array<i64: 8, 128>}]} {
    %c0 = arith.constant 0 : index
    %c0_0 = arith.constant 0 : index
    %0 = vector.load %arg1[%c0, %c0_0] : memref<8x8xf32, #tpu.memory_space<vmem>>, vector<8x8xf32>
    %c0_1 = arith.constant 0 : index
    %c0_2 = arith.constant 0 : index
    %1 = vector.load %arg3[%c0_1, %c0_2] : memref<8x128xf32, #tpu.memory_space<vmem>>, vector<8x128xf32>
    %cst = arith.constant dense<0.000000e+00> : vector<8x128xf32>
    %2 = tpu.matmul %0, %1, %cst {dimension_numbers = #tpu.dot_dimension_numbers<[1], [0], [0], [1], [0, 0, 1, 1], [], []>, precision = #tpu.contract_precision<fp32>} : vector<8x8xf32>, vector<8x128xf32>, vector<8x128xf32> -> vector<8x128xf32>
    %c0_3 = arith.constant 0 : index
    %c0_4 = arith.constant 0 : index
    %3 = vector.load %arg2[%c0_3, %c0_4] : memref<8x128xf32, #tpu.memory_space<vmem>>, vector<8x128xf32>
    %4 = arith.addf %2, %3 : vector<8x128xf32>
    %cst_5 = arith.constant 0.000000e+00 : f32
    %5 = vector.broadcast %cst_5 : f32 to vector<8x128xf32>
    %6 = arith.maximumf %4, %5 : vector<8x128xf32>
    %c0_6 = arith.constant 0 : index
    %c0_7 = arith.constant 0 : index
    %7 = vector.load %arg4[%c0_6, %c0_7] : memref<8x128xf32, #tpu.memory_space<vmem>>, vector<8x128xf32>
    tpu.vector_store %arg4[%c0_6, %c0_7], %6 {strides = array<i32>} : memref<8x128xf32, #tpu.memory_space<vmem>>, vector<8x128xf32>,
    return
  }
  func.func @transform_0(%arg0: i32) -> (i32, i32) {
    %c0_i32 = arith.constant 0 : i32
    %c0_i32_0 = arith.constant 0 : i32
    %c0_i32_1 = arith.constant 0 : i32
    return %c0_i32, %c0_i32_0 : i32, i32
  }
  func.func @transform_1(%arg0: i32) -> (i32, i32) {
    %c0_i32 = arith.constant 0 : i32
    %c0_i32_0 = arith.constant 0 : i32
    %c0_i32_1 = arith.constant 0 : i32
    return %c0_i32, %c0_i32_0 : i32, i32
  }
  func.func @transform_2(%arg0: i32) -> (i32, i32) {
    %c0_i32 = arith.constant 0 : i32
    %c0_i32_0 = arith.constant 0 : i32
    return %c0_i32, %arg0 : i32, i32
  }
  func.func @transform_3(%arg0: i32) -> (i32, i32) {
    %c0_i32 = arith.constant 0 : i32
    %c0_i32_0 = arith.constant 0 : i32
    return %c0_i32, %arg0 : i32, i32
  }
}

</mosaic_0001>

<bundles_post_ra>
// kernel: tpu_custom_call.1
= control target key start
LH: loop header
LB: loop body
LE: loop exit
PB: predicated region body
PF: predicated region fallthrough
CT: control target
= control target key end

     0   :  { %8 = vsyncpa [#allocation3], 0  ;;  %s699_s0 = inlined_call_operand.hbm [shape: f32[8,8], index: 0, kind: input, shape index: {}]   ;;  %s700_s1 = inlined_call_operand.hbm [shape: f32[8,128], index: 1, kind: input, shape index: {}]   ;;  %s701_s2 = inlined_call_operand.hbm [shape: f32[8,128], index: 2, kind: input, shape index: {}]   ;;  %s702_s3 = inlined_call_operand.hbm [shape: f32[8,128], index: 3, kind: output, shape index: {}]  }
   0x1   :  { %9 = vsyncpa [#allocation6], 0 }
   0x2   :  { %10 = vsyncpa [#allocation4], 0  ;;  %s655_s12 = smov [#allocation5]   ;;  %s656_s14 = smov [#allocation2]  }
   0x3   :  { %s27_s13 = sshll.u32 %s655_s12, 4  ;;  %s17_s15 = sshll.u32 %s656_s14, 4  ;;  %s28_s13 = int_to_ptr.vmem [resolvable:$true] %s27_s13  ;;  %s18_s15 = int_to_ptr.vmem [resolvable:$true] %s17_s15 }
   0x4   :  { %s577_s16 = scalar_lea.vmem %s28_s13, 128  ;;  %p582_p1 = scmp.lt.s32.totalorder %s28_s13, %s28_s13 }
   0x5   :  { %p578_p0 = scmp.ne.s32.totalorder %s28_s13, %s577_s16  ;;  %p583_p2 = scmp.lt.s32.totalorder %s577_s16, %s577_s16 }
   0x7   :  { %p584_p3 = por %p583_p2, %p582_p1 }
   0x9   :  { %p585_p4 = pnand %p584_p3, %p578_p0 }
   0xb   :  { %588 = shalt.err (!%p585_p4)
}
   0xc   :  { %30 = dma.hbm_to_vmem [thread:$0]  %s700_s1, 128, %s28_s13, [#allocation6]  }
   0xd   :  { %s597_s19 = scalar_lea.vmem %s18_s15, 128  ;;  %p602_p6 = scmp.lt.s32.totalorder %s18_s15, %s18_s15 }
   0xe   :  { %p598_p5 = scmp.ne.s32.totalorder %s18_s15, %s597_s19  ;;  %p603_p7 = scmp.lt.s32.totalorder %s597_s19, %s597_s19 }
  0x10   :  { %p604_p8 = por %p603_p7, %p602_p6 }
  0x12   :  { %p605_p9 = pnand %p604_p8, %p598_p5 }
  0x14   :  { %608 = shalt.err (!%p605_p9)
}
  0x15   :  { %20 = dma.hbm_to_vmem [thread:$0]  %s699_s0, 128, %s18_s15, [#allocation3]  }
  0x16   :  { %s657_s22 = smov [#allocation7]  }
  0x17   :  { %s37_s23 = sshll.u32 %s657_s22, 4  ;;  %s38_s23 = int_to_ptr.vmem [resolvable:$true] %s37_s23 }
  0x18   :  { %s617_s24 = scalar_lea.vmem %s38_s23, 128  ;;  %p622_p11 = scmp.lt.s32.totalorder %s38_s23, %s38_s23 }
  0x19   :  { %p618_p10 = scmp.ne.s32.totalorder %s38_s23, %s617_s24  ;;  %p623_p12 = scmp.lt.s32.totalorder %s617_s24, %s617_s24 }
  0x1b   :  { %p624_p13 = por %p623_p12, %p622_p11 }
  0x1d   :  { %p625_p0 = pnand %p624_p13, %p618_p10 }
  0x1f   :  { %628 = shalt.err (!%p625_p0)
}
  0x20   :  { %40 = dma.hbm_to_vmem [thread:$0]  %s701_s2, 128, %s38_s23, [#allocation6]  }
  0x21   :  { %649 = dma.done.wait [#allocation3], 128  }
  0x22   :  { %650 = vsyncadd [#allocation3], 4294967168 }
  0x23   :  { %651 = dma.done.wait [#allocation6], 256  }
  0x24   :  { %652 = vsyncadd [#allocation6], 4294967040  ;;  %v658_v0 = vmov 0.0   ;;  %vm659_vm0 = vmmov 0   ;;  %vm53_vm1 = vcmask 64512   ;;  %v51_v1 = vld [vmem:[#allocation7] sm:$0xff] }
  0x25   :  { %533 = vmatprep.subr.mxu0 %v658_v0  ;;  %538 = vmatprep.subr.mxu1 %v658_v0  ;;  %v50_v2 = vld [vmem:[#allocation2] sm:$0xff]  ;;  %v88_v3 = vand.u32 4294901760, %v51_v1  ;;  %v52_v14 = vld [vmem:[#allocation5] sm:$0xff]  ;;  %s660_s0 = smov [#allocation8]  }
  0x26   :  { %535 = vmatprep.mubr.msk.f32.mxu0 %vm659_vm0, %v658_v0  ;;  %540 = vmatprep.mubr.msk.f32.mxu1 %vm659_vm0, %v658_v0  ;;  %v55_v4 = vsel %vm53_vm1, %v50_v2, 0  ;;  %s511_s2 = sshll.u32 %s660_s0, 4  ;;  %s512_s2 = int_to_ptr.vmem [resolvable:$true] %s511_s2 }
  0x27   :  { %v123_v5 = vand.u32 4294901760, %v55_v4  ;;  %534 = vmatpush3.msra.mxu0 %v88_v3  ;;  %v165_v6 = vsub.f32 %v51_v1, %v88_v3  ;;  %s629_s26 = scalar_lea.vmem %s512_s2, 128  ;;  %p634_p2 = scmp.lt.s32.totalorder %s512_s2, %s512_s2 }
  0x28   :  { %543 = vmatprep.subr.mxu0 %v658_v0  ;;  %p630_p1 = scmp.ne.s32.totalorder %s512_s2, %s629_s26  ;;  %p635_p3 = scmp.lt.s32.totalorder %s629_s26, %s629_s26 }
  0x29   :  { %v124_v7 = vsub.f32 %v55_v4, %v123_v5  ;;  %v166_v8 = vand.u32 4294901760, %v165_v6 }
  0x2a   :  { %p636_p4 = por %p635_p3, %p634_p2 }
  0x2b   :  { %v125_v9 = vand.u32 4294901760, %v124_v7  ;;  %v167_v10 = vsub.f32 %v165_v6, %v166_v8 }
  0x2c   :  { %p637_p5 = pnand %p636_p4, %p630_p1 }
  0x2d   :  { %v126_v11 = vsub.f32 %v124_v7, %v125_v9  ;;  %v168_v12 = vand.u32 4294901760, %v167_v10 }
  0x2f   :  { %v127_v13 = vand.u32 4294901760, %v126_v11  ;;  %539 = vmatpush3.msra.mxu1 %v168_v12 }
  0x30   :  { %541 = vmatmul.mubr.f32.vlgmr.msra.gmra.mxu1 %v123_v5  ;;  %548 = vmatprep.subr.mxu1 %v658_v0 }
  0x31   :  { %536 = vmatmul.mubr.f32.vlgmr.msra.gmra.mxu0 %v127_v13  ;;  %549 = vmatpush3.msra.mxu1 %v88_v3 }
  0x32   :  { %544 = vmatpush3.msra.mxu0 %v165_v6  ;;  %545 = vmatprep.mubr.msk.f32.mxu0 %vm659_vm0, %v658_v0 }
  0x33   :  { %550 = vmatprep.mubr.msk.f32.mxu1 %vm659_vm0, %v658_v0  ;;  %553 = vmatprep.subr.mxu0 %v658_v0 }
  0x34   :  { %551 = vmatmul.mubr.f32.vlgmr.msra.gmra.mxu1 %v125_v9  ;;  %558 = vmatprep.subr.mxu1 %v658_v0 }
  0x35   :  { %546 = vmatmul.mubr.f32.vlgmr.msra.gmra.mxu0 %v124_v7  ;;  %559 = vmatpush3.msra.mxu1 %v88_v3 }
  0x36   :  { %554 = vmatpush3.msra.mxu0 %v166_v8  ;;  %555 = vmatprep.mubr.msk.f32.mxu0 %vm659_vm0, %v658_v0 }
  0x37   :  { %560 = vmatprep.mubr.msk.f32.mxu1 %vm659_vm0, %v658_v0 }
  0x38   :  { %561 = vmatmul.mubr.f32.vlgmr.msra.gmra.mxu1 %v123_v5 }
  0x39   :  { %556 = vmatmul.mubr.f32.vlgmr.msra.gmra.mxu0 %v123_v5 }
  0xf0   :  { %v205_v16 = vpop.f32.mrf.mxu1 }
  0xf1   :  { %v129_v15 = vpop.f32.mrf.mxu0 }
  0xf2   :  { %v130_v17 = vadd.f32 %v129_v15, %v52_v14  ;;  %v542_v19 = vpop.f32.mrf.mxu1 }
  0xf3   :  { %v537_v18 = vpop.f32.mrf.mxu0 }
  0xf4   :  { %v206_v20 = vadd.f32 %v205_v16, %v130_v17  ;;  %v353_v22 = vpop.f32.mrf.mxu1 }
  0xf5   :  { %v279_v21 = vpop.f32.mrf.mxu0 }
  0xf6   :  { %v280_v23 = vadd.f32 %v279_v21, %v206_v20  ;;  %v552_v25 = vpop.f32.mrf.mxu1 }
  0xf7   :  { %v547_v24 = vpop.f32.mrf.mxu0 }
  0xf8   :  { %v354_v26 = vadd.f32 %v353_v22, %v280_v23  ;;  %v499_v28 = vpop.f32.mrf.mxu1 }
  0xf9   :  { %v427_v27 = vpop.f32.mrf.mxu0 }
  0xfa   :  { %v428_v29 = vadd.f32 %v427_v27, %v354_v26  ;;  %v562_v31 = vpop.f32.mrf.mxu1 }
  0xfb   :  { %v557_v30 = vpop.f32.mrf.mxu0 }
  0xfc   :  { %v500_v32 = vadd.f32 %v499_v28, %v428_v29 }
  0xfe   :  { %v503_v33 = vmax.f32 %v500_v32, 0.0 }
 0x100   :  { %504 = vst [vmem:[#allocation8] sm:$0xff] %v503_v33 }
 0x101   :  { %640 = shalt.err (!%p637_p5)
}
 0x102   :  { %514 = dma.vmem_to_hbm [thread:$0]  %s512_s2, 128, %s702_s3, [#allocation4]  }
 0x103   :  { %653 = dma.done.wait [#allocation4], 128  }
 0x104   :  { %654 = vsyncadd [#allocation4], 4294967168 }
 0x105   :  { %518 = vsyncpa [#allocation3], 1 }
 0x106   :  { %519 = vsyncpa [#allocation6], 1 }
 0x107   :  { %520 = vsyncpa [#allocation4], 1 }

</bundles_post_ra>
